<compile_context>
chip_gen: v6e
topology: v6e:2x2x1
jax: 0.10.0
libtpu: 0.0.40
codegen_flags: <defaults>
</compile_context>

<pallas_src>
import functools
import math

import jax
import jax.numpy as jnp
import numpy as np
from jax import lax
from jax.experimental import pallas as pl
from jax.experimental.pallas import tpu as pltpu

HALF_LOG_2PI = 0.5 * math.log(2.0 * math.pi)

_LANES = 128
_SUBLANES = 8
_MAX_TILE_ROWS = 8192            # (8192, 128) f32 = 4 MiB per input per pipeline buffer
_NUM_CORES = 2                   # "parallel" core-split axis (2x HBM BW on v7x; ~free on 1-TC chips)
_SMALL_INPUT_ELEMS = 1 << 16     # below this, plain XLA beats the pallas_call launch overhead
_VMEM_LIMIT_BYTES = 48 * 1024 * 1024


# ---------------------------------------------------------------------------
# Pallas kernel: per-core partial sums of (pred - lab)^2
# ---------------------------------------------------------------------------
def _diff_sumsq_kernel(pred_ref, lab_ref, part_ref, *,
                       rows_total, rows_per_tile, tiles_per_core):
    """part_ref is the (8, 128) f32 block owned by core `c`; it holds the
    running lane/sublane-wise partial sums of (pred - lab)^2 for that core."""
    c = pl.program_id(0)            # core-split axis ("parallel")
    j = pl.program_id(1)            # row-tile reduction axis ("arbitrary", last)

    @pl.when(j == 0)
    def _init():
        part_ref[...] = jnp.zeros_like(part_ref)

    # Upcast in-kernel (HBM traffic stays at native dtype; f32 math on all gens).
    d = pred_ref[...].astype(jnp.float32) - lab_ref[...].astype(jnp.float32)
    sq = d * d

    fold_rows = (rows_per_tile % _SUBLANES) == 0      # static Python bool

    def _fold(x):
        # (tile_rows, 128) -> (8, 128): pure per-vreg VPU adds, no cross-sublane XLU.
        if fold_rows:
            return jnp.sum(
                jnp.reshape(x, (rows_per_tile // _SUBLANES, _SUBLANES, _LANES)),
                axis=0)
        return jnp.sum(x, axis=0, keepdims=True)      # tiny full-extent tile fallback

    def _accum(v):
        if fold_rows:
            part_ref[...] += v                        # unmasked full-block store
        else:
            part_ref[0:1, :] += v

    tile = c * tiles_per_core + j
    rows_left = rows_total - tile * rows_per_tile     # <= 0 on clamped safety-net tiles

    @pl.when(rows_left >= rows_per_tile)              # interior tiles: mask-free path
    def _full():
        _accum(_fold(sq))

    @pl.when(rows_left < rows_per_tile)               # final ragged / overhang tile only
    def _tail():
        # NOTE: rows beyond the slab extent in the last block are undefined data.
        # Keep this a select (jnp.where), NOT a multiply-by-zero, so NaN/Inf
        # garbage can never leak into the sum.
        row = lax.broadcasted_iota(jnp.int32, sq.shape, 0)
        _accum(_fold(jnp.where(row < rows_left, sq, 0.0)))


# ---------------------------------------------------------------------------
# Wrapper helpers
# ---------------------------------------------------------------------------
def _to_slab(x):
    """Flatten to a lane-dense (R, 128) slab in the native dtype.
    Free (bitcast-only) when the element count is a multiple of 128."""
    flat = jnp.reshape(x, (-1,))
    n = flat.shape[0]
    rem = (-n) % _LANES
    if rem:
        # TODO(synk): ragged (non-128-multiple) inputs take a one-off jnp.pad copy;
        # the zero padding contributes 0 to the sum of squares.
        flat = jnp.pad(flat, (0, rem))
    return jnp.reshape(flat, (-1, _LANES))


def _plan_tiling(rows, num_cores, row_mult):
    """Pick (tile_rows, tiles_per_core) so the total tile count is a multiple of
    num_cores (exact per-core partition, no overhang re-DMAs) and each tile is
    <= _MAX_TILE_ROWS rows, rounded to the dtype's sublane packing."""
    tiles_per_core = max(1, pl.cdiv(rows, num_cores * _MAX_TILE_ROWS))
    total_tiles = num_cores * tiles_per_core
    tile_rows = pl.cdiv(rows, total_tiles)
    tile_rows = min(rows, pl.cdiv(tile_rows, row_mult) * row_mult)
    return tile_rows, tiles_per_core


@jax.jit
def _xla_loss(predictions, labels, theta):
    """Pure-XLA path: small-input fast path and correctness reference."""
    p = predictions.astype(jnp.float32)
    l = labels.astype(jnp.float32)
    nll = 0.5 * jnp.square(p - l) + HALF_LOG_2PI
    prior_lp = -0.5 * jnp.square(theta.astype(jnp.float32)) - HALF_LOG_2PI
    return jnp.mean(nll) - jnp.mean(prior_lp)


@jax.jit
def _pallas_loss(predictions, labels, theta):
    n = predictions.size
    n_theta = theta.size

    pred2 = _to_slab(predictions)
    lab2 = _to_slab(labels)
    rows = pred2.shape[0]          # padded rows (pad rows contribute 0)

    itemsize = min(predictions.dtype.itemsize, labels.dtype.itemsize)
    row_mult = _SUBLANES * max(1, 4 // itemsize)          # 8 f32, 16 bf16, 32 int8/fp8
    tile_rows, tiles_per_core = _plan_tiling(rows, _NUM_CORES, row_mult)
    r_blocks = pl.cdiv(rows, tile_rows)

    def tile_map(c, j):
        # Clamp is a safety net for tiny inputs where rounding leaves an unused
        # trailing tile; such tiles are fully masked to zero in-kernel.
        return (jnp.minimum(c * tiles_per_core + j, r_blocks - 1), 0)

    kernel = functools.partial(
        _diff_sumsq_kernel,
        rows_total=rows, rows_per_tile=tile_rows, tiles_per_core=tiles_per_core)

    out_bytes = _NUM_CORES * _SUBLANES * _LANES * 4
    cost = pl.CostEstimate(
        flops=3 * n,
        transcendentals=0,
        bytes_accessed=(pred2.size * pred2.dtype.itemsize
                        + lab2.size * lab2.dtype.itemsize
                        + out_bytes))

    partials = pl.pallas_call(
        kernel,
        out_shape=jax.ShapeDtypeStruct((_NUM_CORES * _SUBLANES, _LANES), jnp.float32),
        grid=(_NUM_CORES, tiles_per_core),
        in_specs=[
            pl.BlockSpec((tile_rows, _LANES), tile_map),
            pl.BlockSpec((tile_rows, _LANES), tile_map),
        ],
        out_specs=pl.BlockSpec((_SUBLANES, _LANES), lambda c, j: (c, 0)),
        compiler_params=pltpu.CompilerParams(
            dimension_semantics=("parallel", "arbitrary"),
            vmem_limit_bytes=_VMEM_LIMIT_BYTES),
        cost_estimate=cost,
    )(pred2, lab2)

    like_ssq = jnp.sum(partials)                               # sum_d (pred - lab)^2
    theta_ssq = jnp.sum(jnp.square(theta.astype(jnp.float32)))  # tiny XLA reduction

    likelihood = 0.5 * like_ssq / jnp.float32(max(n, 1)) + HALF_LOG_2PI
    prior_mean = -(0.5 * theta_ssq / jnp.float32(max(n_theta, 1)) + HALF_LOG_2PI)
    return likelihood - prior_mean


def base_map_loss(predictions, labels, theta, *, min_pallas_elems=_SMALL_INPUT_ELEMS):
    """forward(pred, lab) = likelihood(pred, lab) - prior.log_prob(theta).mean()"""
    if predictions.size != labels.size:
        raise ValueError("predictions and labels must have the same element count")
    if predictions.size < min_pallas_elems:
        return _xla_loss(predictions, labels, theta)   # launch overhead dominates tiny inputs
    return _pallas_loss(predictions, labels, theta)


# ---------------------------------------------------------------------------
# Demo / correctness check
# ---------------------------------------------------------------------------
if __name__ == "__main__":
    key = jax.random.PRNGKey(0)
    k1, k2, k3, k4, k5 = jax.random.split(key, 5)

    # "model" parameters: a single Linear(16 -> 32): weight (32, 16) + bias (32,)
    # -> parameter_vector() has 544 entries (deterministic synthetic init).
    W = 0.1 * jax.random.normal(k1, (32, 16), jnp.float32)
    b = jnp.zeros((32,), jnp.float32)
    theta = jnp.concatenate([W.reshape(-1), b.reshape(-1)])

    # Case 1: NCHW predictions / labels, 128-divisible element count (no-pad path).
    predictions = jax.random.normal(k2, (2, 4, 16, 16), jnp.float32)
    labels = jax.random.normal(k3, (2, 4, 16, 16), jnp.float32)
    # min_pallas_elems=0 forces the Pallas path for this demo-sized problem.
    loss = jax.block_until_ready(
        base_map_loss(predictions, labels, theta, min_pallas_elems=0))
    ref = _xla_loss(predictions, labels, theta)
    np.testing.assert_allclose(np.asarray(loss), np.asarray(ref), rtol=1e-5, atol=1e-5)

    # Case 2: ragged element count (exercises the pad fallback + masked tail tile
    # and the exact two-core split with a partial final block).
    predictions2 = jax.random.normal(k4, (3, 5, 17, 19), jnp.float32)
    labels2 = jax.random.normal(k5, (3, 5, 17, 19), jnp.float32)
    loss2 = jax.block_until_ready(
        base_map_loss(predictions2, labels2, theta, min_pallas_elems=0))
    ref2 = _xla_loss(predictions2, labels2, theta)
    np.testing.assert_allclose(np.asarray(loss2), np.asarray(ref2), rtol=1e-5, atol=1e-5)

    print("KERNEL_OK")
</pallas_src>

<mosaic_0001>
module attributes {stable_mosaic.version = 11 : i64} {
  func.func @_diff_sumsq_kernel(%arg0: i32, %arg1: i32, %arg2: memref<8x128xf32, #tpu.memory_space<vmem>>, %arg3: memref<8x128xf32, #tpu.memory_space<vmem>>, %arg4: memref<8x128xf32, #tpu.memory_space<vmem>>) attributes {dimension_semantics = [#tpu.dimension_semantics<parallel>, #tpu.dimension_semantics<arbitrary>], iteration_bounds = array<i64: 2, 1>, scalar_prefetch = 0 : i64, scratch_operands = 0 : i64, tpu.core_type = #tpu.core_type<tc>, window_params = [{transform_indices = @transform_0, window_bounds = array<i64: 8, 128>}, {transform_indices = @transform_1, window_bounds = array<i64: 8, 128>}, {transform_indices = @transform_2, window_bounds = array<i64: 8, 128>}]} {
    %c0_i32 = arith.constant 0 : i32
    %0 = arith.cmpi eq, %arg1, %c0_i32 : i32
    %1 = arith.extui %0 : i1 to i32
    %c0_i32_0 = arith.constant 0 : i32
    %2 = arith.cmpi ne, %1, %c0_i32_0 : i32
    scf.if %2 {
      %cst = arith.constant 0.000000e+00 : f32
      %17 = vector.broadcast %cst : f32 to vector<8x128xf32>
      %c0_8 = arith.constant 0 : index
      %c0_9 = arith.constant 0 : index
      %18 = vector.load %arg4[%c0_8, %c0_9] : memref<8x128xf32, #tpu.memory_space<vmem>>, vector<8x128xf32>
      tpu.vector_store %arg4[%c0_8, %c0_9], %17 {strides = array<i32>} : memref<8x128xf32, #tpu.memory_space<vmem>>, vector<8x128xf32>,
    } else {
    }
    %c0 = arith.constant 0 : index
    %c0_1 = arith.constant 0 : index
    %3 = vector.load %arg2[%c0, %c0_1] : memref<8x128xf32, #tpu.memory_space<vmem>>, vector<8x128xf32>
    %c0_2 = arith.constant 0 : index
    %c0_3 = arith.constant 0 : index
    %4 = vector.load %arg3[%c0_2, %c0_3] : memref<8x128xf32, #tpu.memory_space<vmem>>, vector<8x128xf32>
    %5 = arith.subf %3, %4 : vector<8x128xf32>
    %6 = arith.mulf %5, %5 : vector<8x128xf32>
    %c1_i32 = arith.constant 1 : i32
    %7 = arith.muli %arg0, %c1_i32 : i32
    %8 = arith.addi %7, %arg1 : i32
    %c8_i32 = arith.constant 8 : i32
    %9 = arith.muli %8, %c8_i32 : i32
    %c16_i32 = arith.constant 16 : i32
    %10 = arith.subi %c16_i32, %9 : i32
    %c8_i32_4 = arith.constant 8 : i32
    %11 = arith.cmpi sge, %10, %c8_i32_4 : i32
    %12 = arith.extui %11 : i1 to i32
    %c0_i32_5 = arith.constant 0 : i32
    %13 = arith.cmpi ne, %12, %c0_i32_5 : i32
    scf.if %13 {
      %17 = vector.shape_cast %6 : vector<8x128xf32> to vector<1x8x128xf32>
      %cst = arith.constant dense<0.000000e+00> : vector<8x128xf32>
      %18 = vector.multi_reduction <add>, %17, %cst [0] : vector<1x8x128xf32> to vector<8x128xf32>
      %c0_8 = arith.constant 0 : index
      %c0_9 = arith.constant 0 : index
      %19 = vector.load %arg4[%c0_8, %c0_9] : memref<8x128xf32, #tpu.memory_space<vmem>>, vector<8x128xf32>
      %20 = arith.addf %19, %18 : vector<8x128xf32>
      %c0_10 = arith.constant 0 : index
      %c0_11 = arith.constant 0 : index
      %21 = vector.load %arg4[%c0_10, %c0_11] : memref<8x128xf32, #tpu.memory_space<vmem>>, vector<8x128xf32>
      tpu.vector_store %arg4[%c0_10, %c0_11], %20 {strides = array<i32>} : memref<8x128xf32, #tpu.memory_space<vmem>>, vector<8x128xf32>,
    } else {
    }
    %c8_i32_6 = arith.constant 8 : i32
    %14 = arith.cmpi slt, %10, %c8_i32_6 : i32
    %15 = arith.extui %14 : i1 to i32
    %c0_i32_7 = arith.constant 0 : i32
    %16 = arith.cmpi ne, %15, %c0_i32_7 : i32
    scf.if %16 {
      %17 = tpu.iota {dimensions = array<i32: 0>} : vector<8x128xi32>
      %18 = vector.broadcast %10 : i32 to vector<8x128xi32>
      %19 = arith.cmpi slt, %17, %18 : vector<8x128xi32>
      %cst = arith.constant 0.000000e+00 : f32
      %20 = vector.broadcast %cst : f32 to vector<8x128xf32>
      %21 = arith.select %19, %6, %20 : vector<8x128xi1>, vector<8x128xf32>
      %22 = vector.shape_cast %21 : vector<8x128xf32> to vector<1x8x128xf32>
      %cst_8 = arith.constant dense<0.000000e+00> : vector<8x128xf32>
      %23 = vector.multi_reduction <add>, %22, %cst_8 [0] : vector<1x8x128xf32> to vector<8x128xf32>
      %c0_9 = arith.constant 0 : index
      %c0_10 = arith.constant 0 : index
      %24 = vector.load %arg4[%c0_9, %c0_10] : memref<8x128xf32, #tpu.memory_space<vmem>>, vector<8x128xf32>
      %25 = arith.addf %24, %23 : vector<8x128xf32>
      %c0_11 = arith.constant 0 : index
      %c0_12 = arith.constant 0 : index
      %26 = vector.load %arg4[%c0_11, %c0_12] : memref<8x128xf32, #tpu.memory_space<vmem>>, vector<8x128xf32>
      tpu.vector_store %arg4[%c0_11, %c0_12], %25 {strides = array<i32>} : memref<8x128xf32, #tpu.memory_space<vmem>>, vector<8x128xf32>,
    } else {
    }
    return
  }
  func.func @transform_0(%arg0: i32, %arg1: i32) -> (i32, i32) {
    %c1_i32 = arith.constant 1 : i32
    %0 = arith.muli %arg0, %c1_i32 : i32
    %1 = arith.addi %0, %arg1 : i32
    %c1_i32_0 = arith.constant 1 : i32
    %2 = arith.minsi %1, %c1_i32_0 : i32
    %c0_i32 = arith.constant 0 : i32
    %c0_i32_1 = arith.constant 0 : i32
    return %2, %c0_i32 : i32, i32
  }
  func.func @transform_1(%arg0: i32, %arg1: i32) -> (i32, i32) {
    %c1_i32 = arith.constant 1 : i32
    %0 = arith.muli %arg0, %c1_i32 : i32
    %1 = arith.addi %0, %arg1 : i32
    %c1_i32_0 = arith.constant 1 : i32
    %2 = arith.minsi %1, %c1_i32_0 : i32
    %c0_i32 = arith.constant 0 : i32
    %c0_i32_1 = arith.constant 0 : i32
    return %2, %c0_i32 : i32, i32
  }
  func.func @transform_2(%arg0: i32, %arg1: i32) -> (i32, i32) {
    %c0_i32 = arith.constant 0 : i32
    %c0_i32_0 = arith.constant 0 : i32
    return %arg0, %c0_i32 : i32, i32
  }
}

</mosaic_0001>

<bundles_post_ra>
// kernel: _pallas_loss.1
= control target key start
LH: loop header
LB: loop body
LE: loop exit
PB: predicated region body
PF: predicated region fallthrough
CT: control target
= control target key end

     0   :  { %s400_s9 = smov 0   ;;  %s402_s10 = smov 0   ;;  %s436_s0 = inlined_call_operand.vmem [shape: f32[16,128], index: 0, kind: input, shape index: {}]   ;;  %s437_s1 = inlined_call_operand.vmem [shape: f32[16,128], index: 1, kind: input, shape index: {}]   ;;  %s438_s2 = inlined_call_operand.vmem [shape: f32[16,128], index: 2, kind: output, shape index: {}]  }
   0x1   :  { %s404_s11 = smov 0  }
   0x2 LB: > { %s24_s12 = sadd.s32 1, %s378_s10  ;;  %p320_p0 = scmp.ge.s32.totalorder %s382_s11, 1  ;;  %s382_s11 = sphi %s404_s11, %s12_s11   ;;  %s378_s10 = sphi %s402_s10, %s440_s10   ;;  %s374_s9 = sphi %s400_s9, %s439_s9  }
   0x3   : > { %p26_p1 = scmp.ge.s32.totalorder %s24_s12, 2  ;;  %p156_p2 = scmp.lt.s32.totalorder %s382_s11, 3 }
   0x5   : > { %s442_s12 = smov (%p26_p1, %s24_s12), 0  ;;  %p157_p3 = pnand %p320_p0, %p156_p2 }
   0x6   : > { %p187_p4 = scmp.lt.s32.totalorder (!%p157_p3), %s374_s9, 1  ;;  %s330_s13 = sshll.u32 (!%p157_p3), %s374_s9, 3 }
   0x7   : > { %160 = sbr.rel (%p157_p3) target bundleno = 43 (0x2b), region = 28  ;;  %s221_s14 = ssub.s32 (!%p157_p3), 16, %s330_s13 }
   0x8   : > { %p331_p5 = scmp.lt.s32.totalorder (!%p157_p3), %s221_s14, 8 }
   0xc   : > { %s444_s9 = smov (!%p187_p4, %s374_s9), 1  ;;  %v384_v0 = vmov 0.0  }
   0xd   : > { %s190_s15 = scalar_select %p187_p4, %s444_s9, 1 }
   0xe   : > { %s329_s16 = sshll.u32 %s444_s9, 3 }
   0xf   : > { %s324_s17 = sshll.u32 %s190_s15, 3  ;;  %s209_s20 = scalar_lea.vmem %s438_s2, %s329_s16 }
  0x10   : > { %s192_s23 = scalar_lea.vmem %s436_s0, %s324_s17  ;;  %s202_s26 = scalar_lea.vmem %s437_s1, %s324_s17  ;;  %214 = vst [vmem:[%s209_s20] sm:$0xff] %v384_v0 }
  0x11   : > { %v215_v1 = vld [vmem:[%s192_s23] sm:$0xff]  ;;  %225 = sbr.rel (%p331_p5) target bundleno = 27 (0x1b), region = 36 }
  0x12   : > { %v216_v2 = vld [vmem:[%s202_s26] sm:$0xff] }
  0x13   : > { %v217_v3 = vsub.f32 %v215_v1, %v216_v2 }
  0x15   : > { %v218_v4 = vmul.f32 %v217_v3, %v217_v3 }
  0x17   : > { %v227_v5 = vld [vmem:[%s209_s20] sm:$0xff] }
  0x18   : > { %v228_v6 = vadd.f32 %v227_v5, %v218_v4 }
  0x1a   : > { %229 = vst [vmem:[%s209_s20] sm:$0xff] %v228_v6 }
  0x1b PF: > { %p332_p6 = scmp.ge.s32.totalorder %s221_s14, 8 }
  0x1d   : > { %233 = sbr.rel (%p332_p6) target bundleno = 43 (0x2b), region = 40 }
  0x22   : > { %v234_v7 = vlaneseq  ;;  %v236_v8 = vstv %s221_s14  ;;  %v240_v10 = vld [vmem:[%s209_s20] sm:$0xff] }
  0x24   : > { %v235_v9 = vshrl.u32 %v234_v7, 7 }
  0x26   : > { %vm237_vm0 = vcmp.lt.s32.totalorder %v235_v9, %v236_v8 }
  0x27   : > { %v238_v11 = vsel %vm237_vm0, %v218_v4, 0.0 }
  0x28   : > { %v241_v12 = vadd.f32 %v240_v10, %v238_v11 }
  0x2a   : > { %242 = vst [vmem:[%s209_s20] sm:$0xff] %v241_v12 }
  0x2b PF: > { %s12_s11 = sadd.s32 1, %s382_s11   ;;  %s439_s9 = smov %s378_s10 }
  0x2c   : > { %p9_p7 = scmp.ge.s32.totalorder %s12_s11, 4   ;;  %s440_s10 = smov %s442_s12 }
  0x2e   :  { %11 = sbr.rel (!%p9_p7) target bundleno = 2 (0x2), region = 73 }

</bundles_post_ra>
